<compile_context>
chip_gen: v7x
topology: tpu7x:2x2x1
jax: 0.10.0
libtpu: 0.0.40
codegen_flags: <defaults>
</compile_context>

<pallas_src>
import functools

import jax
import jax.numpy as jnp
from jax import lax
from jax.experimental import pallas as pl
from jax.experimental.pallas import tpu as pltpu


def _round_up(a, b):
    return (a + b - 1) // b * b


def _pos_enc_kernel(sel_ref, fr_ref, x_ref, o_ref, *, kf):
    # sel_ref: (F, K*F)   0/1 selection matrix (constant across grid steps)
    # fr_ref:  (1, K*F)   frequency row, frequency-slow / feature-fast
    # x_ref:   (block_rows, F)
    # o_ref:   (block_rows, 2*K*F)
    x = x_ref[...].astype(jnp.float32)                       # (T, F)

    # Feature expansion via the MXU (no 3-D broadcast / reshape relayout).
    # HIGHEST precision keeps the 0/1 selection exact for f32 inputs.
    x_expanded = jnp.dot(
        x,
        sel_ref[...],
        preferred_element_type=jnp.float32,
        precision=lax.Precision.HIGHEST,
    )                                                        # (T, K*F)

    # Pure 2-D VPU multiply by the per-column frequency (exact f32 product,
    # identical to the torch broadcast x.unsqueeze(-2) * freqs.unsqueeze(-1)).
    x_proj = x_expanded * fr_ref[...]                        # (T, K*F)

    # Two direct half-stores instead of a concatenate.
    o_ref[:, :kf] = jnp.sin(x_proj).astype(o_ref.dtype)
    o_ref[:, kf:] = jnp.cos(x_proj).astype(o_ref.dtype)


def positional_encoding(x, max_freq, num_freqs, *, tile_n=2048):
    """x: (num_rays, num_samples, F) -> (num_rays, num_samples, 2*K*F)."""
    num_rays, num_samples, in_features = x.shape
    n = num_rays * num_samples
    kf = num_freqs * in_features
    out_dim = 2 * kf

    # Deterministic "parameters" (registered buffer in the torch module),
    # always built in f32.
    freqs = (2.0 ** jnp.linspace(0.0, float(max_freq), num_freqs)).astype(jnp.float32)
    fr_row = jnp.repeat(freqs, in_features).reshape(1, kf)            # (1, K*F)
    sel = jnp.tile(jnp.eye(in_features, dtype=jnp.float32),
                   (1, num_freqs))                                    # (F, K*F)

    # --- choose row tile: as large as possible subject to a VMEM budget that
    # accounts for 128-lane padding of narrow (<128-wide) arrays.
    lane = 128

    def _pad_lanes(d):
        return _round_up(max(int(d), 1), lane)

    # 2x double-buffered input + 2x double-buffered output + ~4 f32 temporaries.
    bytes_per_row = 4 * (2 * _pad_lanes(in_features)
                         + 2 * _pad_lanes(out_dim)
                         + 4 * _pad_lanes(kf))
    vmem_budget = 8 * 1024 * 1024
    max_rows_vmem = max(8, (vmem_budget // bytes_per_row) // 8 * 8)

    block_rows = min(int(tile_n), _round_up(n, 8), max_rows_vmem)
    block_rows = max(8, _round_up(block_rows, 8))
    n_pad = _round_up(n, block_rows)
    grid_rows = n_pad // block_rows

    x_flat = x.reshape(n, in_features)
    if n_pad != n:
        x_flat = jnp.pad(x_flat, ((0, n_pad - n), (0, 0)))

    kernel = functools.partial(_pos_enc_kernel, kf=kf)

    out_flat = pl.pallas_call(
        kernel,
        out_shape=jax.ShapeDtypeStruct((n_pad, out_dim), x.dtype),
        grid_spec=pltpu.PrefetchScalarGridSpec(
            num_scalar_prefetch=0,
            grid=(grid_rows,),
            in_specs=[
                pl.BlockSpec((in_features, kf), lambda i: (0, 0)),       # sel (constant)
                pl.BlockSpec((1, kf), lambda i: (0, 0)),                 # freq row (constant)
                pl.BlockSpec((block_rows, in_features), lambda i: (i, 0)),
            ],
            out_specs=pl.BlockSpec((block_rows, out_dim), lambda i: (i, 0)),
        ),
        compiler_params=pltpu.CompilerParams(
            dimension_semantics=("parallel",),
            vmem_limit_bytes=32 * 1024 * 1024,
        ),
    )(sel, fr_row, x_flat)

    if n_pad != n:
        out_flat = out_flat[:n]
    return out_flat.reshape(num_rays, num_samples, out_dim)


def positional_encoding_ref(x, max_freq, num_freqs):
    """Pure-JAX reference mirroring the torch forward exactly."""
    freqs = (2.0 ** jnp.linspace(0.0, float(max_freq), num_freqs)).astype(jnp.float32)
    x_proj = x.astype(jnp.float32)[..., None, :] * freqs[:, None]      # (..., K, F)
    x_proj = x_proj.reshape(*x.shape[:-1], -1)                         # (..., K*F)
    out = jnp.concatenate([jnp.sin(x_proj), jnp.cos(x_proj)], axis=-1)
    return out.astype(x.dtype)


if __name__ == "__main__":
    key = jax.random.PRNGKey(0)
    num_rays, num_samples, in_features = 2, 8, 3
    max_freq, num_freqs = 4, 6

    x = jax.random.normal(key, (num_rays, num_samples, in_features), dtype=jnp.float32)

    out = positional_encoding(x, max_freq, num_freqs)
    out = jax.block_until_ready(out)

    ref = positional_encoding_ref(x, max_freq, num_freqs)
    assert out.shape == (num_rays, num_samples, 2 * num_freqs * in_features)
    assert jnp.allclose(out, ref, atol=1e-5, rtol=1e-5), "mismatch vs reference"

    # Exercise the multi-block grid + ragged-tail (padding) path with a tiny tile.
    x2 = jax.random.normal(jax.random.PRNGKey(1), (3, 33, in_features), dtype=jnp.float32)
    out2 = jax.block_until_ready(
        positional_encoding(x2, max_freq, num_freqs, tile_n=32))
    ref2 = positional_encoding_ref(x2, max_freq, num_freqs)
    assert out2.shape == (3, 33, 2 * num_freqs * in_features)
    assert jnp.allclose(out2, ref2, atol=1e-5, rtol=1e-5), "mismatch vs reference (tiled)"

    print("KERNEL_OK")
</pallas_src>

<mosaic_0001>
module attributes {stable_mosaic.version = 11 : i64} {
  func.func @_pos_enc_kernel(%arg0: i32, %arg1: memref<3x18xf32, #tpu.memory_space<vmem>>, %arg2: memref<1x18xf32, #tpu.memory_space<vmem>>, %arg3: memref<16x3xf32, #tpu.memory_space<vmem>>, %arg4: memref<16x36xf32, #tpu.memory_space<vmem>>) attributes {dimension_semantics = [#tpu.dimension_semantics<parallel>], iteration_bounds = array<i64: 1>, scalar_prefetch = 0 : i64, scratch_operands = 0 : i64, tpu.core_type = #tpu.core_type<tc>, window_params = [{pipeline_mode = #tpu.pipeline_mode<synchronous>, transform_indices = @transform_0, window_bounds = array<i64: 3, 18>}, {pipeline_mode = #tpu.pipeline_mode<synchronous>, transform_indices = @transform_1, window_bounds = array<i64: 1, 18>}, {transform_indices = @transform_2, window_bounds = array<i64: 16, 3>}, {transform_indices = @transform_3, window_bounds = array<i64: 16, 36>}]} {
    %c0 = arith.constant 0 : index
    %c0_0 = arith.constant 0 : index
    %0 = vector.load %arg3[%c0, %c0_0] : memref<16x3xf32, #tpu.memory_space<vmem>>, vector<16x3xf32>
    %c0_1 = arith.constant 0 : index
    %c0_2 = arith.constant 0 : index
    %1 = vector.load %arg1[%c0_1, %c0_2] : memref<3x18xf32, #tpu.memory_space<vmem>>, vector<3x18xf32>
    %cst = arith.constant dense<0.000000e+00> : vector<16x18xf32>
    %2 = tpu.matmul %0, %1, %cst {dimension_numbers = #tpu.dot_dimension_numbers<[1], [0], [0], [1], [0, 0, 1, 1], [], []>, precision = #tpu.contract_precision<fp32>} : vector<16x3xf32>, vector<3x18xf32>, vector<16x18xf32> -> vector<16x18xf32>
    %c0_3 = arith.constant 0 : index
    %c0_4 = arith.constant 0 : index
    %3 = vector.load %arg2[%c0_3, %c0_4] : memref<1x18xf32, #tpu.memory_space<vmem>>, vector<1x18xf32>
    %4 = vector.broadcast %3 : vector<1x18xf32> to vector<16x18xf32>
    %5 = arith.mulf %2, %4 : vector<16x18xf32>
    %6 = math.sin %5 : vector<16x18xf32>
    %c0_5 = arith.constant 0 : index
    %c0_6 = arith.constant 0 : index
    %7 = vector.load %arg4[%c0_5, %c0_6] : memref<16x36xf32, #tpu.memory_space<vmem>>, vector<16x18xf32>
    tpu.vector_store %arg4[%c0_5, %c0_6], %6 {strides = array<i32>} : memref<16x36xf32, #tpu.memory_space<vmem>>, vector<16x18xf32>,
    %8 = math.cos %5 : vector<16x18xf32>
    %c0_7 = arith.constant 0 : index
    %c18 = arith.constant 18 : index
    %9 = vector.load %arg4[%c0_7, %c18] : memref<16x36xf32, #tpu.memory_space<vmem>>, vector<16x18xf32>
    tpu.vector_store %arg4[%c0_7, %c18], %8 {strides = array<i32>} : memref<16x36xf32, #tpu.memory_space<vmem>>, vector<16x18xf32>,
    return
  }
  func.func @transform_0(%arg0: i32) -> (i32, i32) {
    %c0_i32 = arith.constant 0 : i32
    %c0_i32_0 = arith.constant 0 : i32
    %c0_i32_1 = arith.constant 0 : i32
    return %c0_i32, %c0_i32_0 : i32, i32
  }
  func.func @transform_1(%arg0: i32) -> (i32, i32) {
    %c0_i32 = arith.constant 0 : i32
    %c0_i32_0 = arith.constant 0 : i32
    %c0_i32_1 = arith.constant 0 : i32
    return %c0_i32, %c0_i32_0 : i32, i32
  }
  func.func @transform_2(%arg0: i32) -> (i32, i32) {
    %c0_i32 = arith.constant 0 : i32
    %c0_i32_0 = arith.constant 0 : i32
    return %arg0, %c0_i32 : i32, i32
  }
  func.func @transform_3(%arg0: i32) -> (i32, i32) {
    %c0_i32 = arith.constant 0 : i32
    %c0_i32_0 = arith.constant 0 : i32
    return %arg0, %c0_i32 : i32, i32
  }
}

</mosaic_0001>

<bundles_post_ra>
// kernel: tpu_custom_call.1
= control target key start
LH: loop header
LB: loop body
LE: loop exit
PB: predicated region body
PF: predicated region fallthrough
CT: control target
= control target key end

     0   :  { %vm25_vm0 = vcmask 1042432   ;;  %vm18_vm1 = vcmask 23552   ;;  %s1230_s0 = inlined_call_operand.vmem [shape: f32[3,18], index: 0, kind: input, shape index: {}]   ;;  %s1231_s1 = inlined_call_operand.vmem [shape: f32[1,18], index: 1, kind: input, shape index: {}]   ;;  %s1232_s2 = inlined_call_operand.vmem [shape: f32[16,3], index: 2, kind: input, shape index: {}]   ;;  %s1233_s3 = inlined_call_operand.hbm [shape: f32[16,36], index: 3, kind: output, shape index: {}]  }
   0x1   :  { %v17_v0 = vld [vmem:[%s1230_s0] sm:$0x7]  ;;  %v16_v2 = vld [vmem:[%s1232_s2 + $0x8] sm:$0xff] }
   0x2   :  { %v15_v1 = vld [vmem:[%s1232_s2] sm:$0xff]  ;;  %v27_v3 = vsel %vm25_vm0, %v17_v0, 0  ;;  %v23_v5 = vsel %vm18_vm1, %v16_v2, 0 }
   0x3   :  { %v20_v4 = vsel %vm18_vm1, %v15_v1, 0 }
   0x4   :  { %8 = vsyncpa [#allocation3], 0  ;;  %v30_v6 = vand.u32 4294901760, %v27_v3  ;;  %v95_v7 = vand.u32 4294901760, %v20_v4  ;;  %v105_v8 = vand.u32 4294901760, %v23_v5  ;;  %s1103_s18 = smov [#allocation2]  }
   0x5   :  { %v971_v24 = vld [vmem:[%s1231_s1] ss:$0 sm:$0xff]  ;;  %v1096_v53 = vmov 2102212464   ;;  %v1097_v55 = vmov 920167782  }
   0x6   :  { %1021 = vmatprep.subr.mxu0 %v30_v6  ;;  %v96_v9 = vsub.f32 %v20_v4, %v95_v7  ;;  %v106_v10 = vsub.f32 %v23_v5, %v105_v8  ;;  %1006 = vmatprep.subr.mxu1 %v30_v6  ;;  %v117_v11 = vsub.f32 %v27_v3, %v30_v6  ;;  %v1098_v58 = vmov 683565275   ;;  %s1102_s1 = smov 18   ;;  %s960_s19 = sshll.u32 %s1103_s18, 4  ;;  %s961_s19 = int_to_ptr.vmem [resolvable:$true] %s960_s19 }
   0x7   :  { %1022 = vmatpush3.msra.mxu0 %v30_v6  ;;  %1007 = vmatpush3.msra.mxu1 %v30_v6  ;;  %v1099_v61 = vmov 1326507024   ;;  %v1100_v63 = vmov 2475754826   ;;  %v1101_v1 = vmov 2131351028   ;;  %p1077_p1 = scmp.lt.s32.totalorder %s961_s19, %s961_s19 }
   0x8   :  { %v97_v12 = vand.u32 4294901760, %v96_v9  ;;  %v107_v13 = vand.u32 4294901760, %v106_v10  ;;  %v118_v14 = vand.u32 4294901760, %v117_v11  ;;  %s1072_s20 = scalar_lea.vmem %s961_s19, 256 }
   0x9   :  { %p1073_p0 = scmp.ne.s32.totalorder %s961_s19, %s1072_s20  ;;  %p1078_p2 = scmp.lt.s32.totalorder %s1072_s20, %s1072_s20 }
   0xa   :  { %1023 = vmatprep.mubr.f32.mxu0 %v97_v12  ;;  %v98_v15 = vsub.f32 %v96_v9, %v97_v12  ;;  %v119_v16 = vsub.f32 %v117_v11, %v118_v14  ;;  %1026 = vmatprep.subr.mxu0 %v118_v14  ;;  %v108_v17 = vsub.f32 %v106_v10, %v107_v13 }
   0xb   :  { %1024 = vmatmul.mubr.f32.vlgmr.msra.gmra.mrb[0].mxu0 %v107_v13  ;;  %p1079_p3 = por %p1078_p2, %p1077_p1 }
   0xc   :  { %v99_v18 = vand.u32 4294901760, %v98_v15  ;;  %v120_v19 = vand.u32 4294901760, %v119_v16  ;;  %v109_v20 = vand.u32 4294901760, %v108_v17  ;;  %1027 = vmatpush3.msra.mxu0 %v118_v14  ;;  %1028 = vmatprep.mubr.f32.mxu0 %v95_v7 }
   0xd   :  { %1031 = vmatprep.subr.mxu0 %v30_v6  ;;  %p1080_p4 = pnand %p1079_p3, %p1073_p0 }
   0xe   :  { %1008 = vmatprep.mubr.f32.mxu1 %v99_v18  ;;  %1011 = vmatprep.subr.mxu1 %v120_v19 }
   0xf   :  { %1009 = vmatmul.mubr.f32.vlgmr.msra.gmra.mrb[0].mxu1 %v109_v20 }
  0x10   :  { %1012 = vmatpush3.msra.mxu1 %v120_v19  ;;  %1013 = vmatprep.mubr.f32.mxu1 %v95_v7 }
  0x11   :  { %1016 = vmatprep.subr.mxu1 %v117_v11 }
  0x13   :  { %1029 = vmatmul.mubr.f32.vlgmr.msra.gmra.mrb[0].mxu0 %v105_v8 }
  0x14   :  { %1032 = vmatpush3.msra.mxu0 %v30_v6  ;;  %1033 = vmatprep.mubr.f32.mxu0 %v95_v7 }
  0x17   :  { %1014 = vmatmul.mubr.f32.vlgmr.msra.gmra.mrb[0].mxu1 %v105_v8 }
  0x18   :  { %1017 = vmatpush3.msra.mxu1 %v117_v11  ;;  %1018 = vmatprep.mubr.f32.mxu1 %v96_v9 }
  0x1b   :  { %1034 = vmatmul.mubr.f32.vlgmr.msra.gmra.mrb[0].mxu0 %v105_v8 }
  0x1f   :  { %1019 = vmatmul.mubr.f32.vlgmr.msra.gmra.mrb[0].mxu1 %v106_v10 }
  0xee   :  { %v1035_v21 = vpop.f32.mrb[0].mxu0 }
  0xef   :  { %v508_v22 = vpop.f32.mrb[1].mxu0 }
  0xf2   :  { %v1020_v23 = vpop.f32.mrb[0].mxu1 }
  0xf3   :  { %v1036_v25 = vadd.f32 %v1035_v21, %v1020_v23  ;;  %v267_v26 = vpop.f32.mrb[1].mxu1 }
  0xf4   :  { %v1037_v27 = vadd.f32 %v508_v22, %v267_v26 }
  0xf5   :  { %v1138_v28 = vmul.f32 %v1036_v25, %v971_v24 }
  0xf6   :  { %v1140_v29 = vmul.f32 %v1037_v27, %v971_v24 }
  0xf7   :  { %v634_v30 = vand.u32 2139095040, %v1138_v28  ;;  %v631_v31 = vand.u32 2147483647, %v1138_v28 }
  0xf8   :  { %v530_v32 = vand.u32 2139095040, %v1140_v29  ;;  %v527_v33 = vand.u32 2147483647, %v1140_v29  ;;  %vm529_vm0 = vcmp.lt.s32.totalorder %v1140_v29, 0 }
  0xf9   :  { %v635_v34 = vshrl.u32 %v634_v30, 23  ;;  %v638_v36 = vand.u32 8388607, %v631_v31 }
  0xfa   :  { %v531_v35 = vshrl.u32 %v530_v32, 23  ;;  %v534_v38 = vand.u32 8388607, %v527_v33  ;;  %vm528_vm1 = vcmp.le.f32.partialorder %v527_v33, 0.7853982 }
  0xfb   :  { %v976_v37 = vadd.s32 4294967169, %v635_v34  ;;  %v639_v42 = vor.u32 8388608, %v638_v36 }
  0xfc   :  { %v972_v39 = vadd.s32 4294967169, %v531_v35  ;;  %v535_v43 = vor.u32 8388608, %v534_v38 }
  0xfd   :  { %v641_v40 = vadd.s32 1, %v976_v37  ;;  %v1152_v48 = vshll.u32 %v639_v42, 8 }
  0xfe   :  { %v537_v41 = vadd.s32 1, %v972_v39  ;;  %v1157_v52 = vshll.u32 %v535_v43, 8 }
  0xff   :  { %vm642_vm2 = vcmp.gt.s32.totalorder %v641_v40, 0 }
 0x100   :  { %v643_v44 = vsel %vm642_vm2, %v641_v40, 0  ;;  %vm538_vm3 = vcmp.gt.s32.totalorder %v537_v41, 0  ;;  %vm633_vm2 = vcmp.lt.s32.totalorder %v1138_v28, 0 }
 0x101   :  { %v1150_v45 = vand.u32 31, %v643_v44  ;;  %v539_v46 = vsel %vm538_vm3, %v537_v41, 0  ;;  %v1154_v49 = vshrl.u32 %v643_v44, 5  ;;  %vm632_vm3 = vcmp.le.f32.partialorder %v631_v31, 0.7853982 }
 0x102   :  { %v541_v47 = vand.u32 31, %v539_v46  ;;  %v540_v51 = vshrl.u32 %v539_v46, 5 }
 0x103   :  { %v646_v50 = vsub.s32 32, %v1150_v45  ;;  %v657_v54 = vshll.u32 %v1096_v53, %v1150_v45  ;;  %v660_v56 = vshll.u32 %v1097_v55, %v1150_v45  ;;  %vm666_vm5 = vcmp.lt.s32.totalorder %v1154_v49, 4 }
 0x104   :  { %v542_v57 = vsub.s32 32, %v541_v47  ;;  %v544_v59 = vshll.u32 %v1098_v58, %v541_v47  ;;  %v547_v0 = vshll.u32 %v1100_v63, %v541_v47  ;;  %v550_v2 = vshll.u32 %v1101_v1, %v541_v47 }
 0x105   :  { %v658_v60 = vshrl.u32 %v1097_v55, %v646_v50  ;;  %v661_v62 = vshrl.u32 %v1099_v61, %v646_v50  ;;  %v553_v6 = vshll.u32 %v1096_v53, %v541_v47  ;;  %v556_v9 = vshll.u32 %v1097_v55, %v541_v47 }
 0x106   :  { %v545_v3 = vshrl.u32 %v1100_v63, %v542_v57  ;;  %v548_v4 = vshrl.u32 %v1101_v1, %v542_v57  ;;  %v551_v5 = vshrl.u32 %v1096_v53, %v542_v57  ;;  %v543_v7 = vshrl.u32 %v1098_v58, %v542_v57 }
 0x107   :  { %v554_v8 = vshrl.u32 %v1097_v55, %v542_v57  ;;  %v557_v10 = vshrl.u32 %v1099_v61, %v542_v57  ;;  %v659_v11 = vor.u32 %v658_v60, %v657_v54  ;;  %v662_v15 = vor.u32 %v661_v62, %v660_v56 }
 0x108   :  { %v546_v12 = vor.u32 %v545_v3, %v544_v59  ;;  %v549_v13 = vor.u32 %v548_v4, %v547_v0  ;;  %v552_v14 = vor.u32 %v551_v5, %v550_v2  ;;  %vm559_vm4 = vcmp.lt.s32.totalorder %v540_v51, 1 }
 0x109   :  { %v555_v16 = vor.u32 %v554_v8, %v553_v6  ;;  %v558_v17 = vor.u32 %v557_v10, %v556_v9  ;;  %vm561_vm6 = vcmp.lt.s32.totalorder %v540_v51, 3  ;;  %vm562_vm7 = vcmp.lt.s32.totalorder %v540_v51, 4 }
 0x10a   :  { %v563_v18 = vsel %vm559_vm4, %v543_v7, %v546_v12  ;;  %v564_v19 = vsel %vm562_vm7, %v552_v14, 2102212464  ;;  %v567_v20 = vsel %vm559_vm4, %v546_v12, %v549_v13  ;;  %v571_v22 = vsel %vm559_vm4, %v549_v13, %v552_v14 }
 0x10b   :  { %v568_v21 = vsel %vm562_vm7, %v555_v16, 920167782  ;;  %vm560_vm8 = vcmp.lt.s32.totalorder %v540_v51, 2  ;;  %v565_v23 = vsel %vm561_vm6, %v549_v13, %v564_v19  ;;  %v572_v25 = vsel %vm562_vm7, %v558_v17, 1326507024 }
 0x10c   :  { %v569_v24 = vsel %vm561_vm6, %v552_v14, %v568_v21  ;;  %v672_v26 = vsel %vm666_vm5, %v659_v11, 920167782  ;;  %v676_v27 = vsel %vm666_vm5, %v662_v15, 1326507024  ;;  %v573_v32 = vsel %vm561_vm6, %v555_v16, %v572_v25 }
 0x10d   :  { %v570_v30 = vsel %vm560_vm8, %v567_v20, %v569_v24  ;;  %v566_v34 = vsel %vm560_vm8, %v563_v18, %v565_v23  ;;  %v574_v35 = vsel %vm560_vm8, %v571_v22, %v573_v32  ;;  %v648_v40 = vshll.u32 %v1098_v58, %v1150_v45 }
 0x10e   :  { %v1167_v36 = vmul.u32.u64.low %v1157_v52, %v570_v30  ;;  %v1168_v37 = vmul.u32.u64.high %v1157_v52, %v570_v30, %v1167_v36  ;;  %v1171_v38 = vmul.u32.u64.low %v1157_v52, %v574_v35  ;;  %v1172_v39 = vmul.u32.u64.high %v1157_v52, %v574_v35, %v1171_v38 }
 0x10f   :  { %v649_v41 = vshrl.u32 %v1100_v63, %v646_v50  ;;  %v651_v42 = vshll.u32 %v1100_v63, %v1150_v45  ;;  %v652_v43 = vshrl.u32 %v1101_v1, %v646_v50  ;;  %v654_v44 = vshll.u32 %v1101_v1, %v1150_v45 }
 0x110   :  { %v655_v46 = vshrl.u32 %v1096_v53, %v646_v50  ;;  %v582_v47 = vmul.u32 %v1157_v52, %v566_v34  ;;  %v647_v51 = vshrl.u32 %v1098_v58, %v646_v50  ;;  %vm663_vm9 = vcmp.lt.s32.totalorder %v1154_v49, 1 }
 0x111   :  { %v650_v54 = vor.u32 %v649_v41, %v648_v40  ;;  %v585_v55 = vadd.s32 1, %v1168_v37  ;;  %v653_v56 = vor.u32 %v652_v43, %v651_v42  ;;  %vm665_vm10 = vcmp.lt.s32.totalorder %v1154_v49, 3 }
 0x112   :  { %v656_v57 = vor.u32 %v655_v46, %v654_v44  ;;  %vm584_vm11 = vc.u32 %v1172_v39, %v1167_v36  ;;  %vm664_vm12 = vcmp.lt.s32.totalorder %v1154_v49, 2  ;;  %v677_v53 = vsel %vm665_vm10, %v659_v11, %v676_v27 }
 0x113   :  { %v667_v45 = vsel %vm663_vm9, %v647_v51, %v650_v54  ;;  %v586_v52 = vsel %vm584_vm11, %v585_v55, %v1168_v37  ;;  %v671_v58 = vsel %vm663_vm9, %v650_v54, %v653_v56  ;;  %v583_v23 = vadd.s32 %v1167_v36, %v1172_v39 }
 0x114   :  { %v668_v50 = vsel %vm666_vm5, %v656_v57, 2102212464  ;;  %v673_v59 = vsel %vm665_vm10, %v656_v57, %v672_v26  ;;  %v587_v60 = vadd.s32 %v586_v52, %v582_v47  ;;  %v675_v63 = vsel %vm663_vm9, %v653_v56, %v656_v57 }
 0x115   :  { %v669_v61 = vsel %vm665_vm10, %v653_v56, %v668_v50  ;;  %v674_v62 = vsel %vm664_vm12, %v671_v58, %v673_v59  ;;  %v678_v0 = vsel %vm664_vm12, %v675_v63, %v677_v53  ;;  %vm735_vm4 = vcmask 146432  }
 0x116   :  { %v1193_v1 = vmul.u32.u64.low %v1152_v48, %v674_v62  ;;  %v1194_v2 = vmul.u32.u64.high %v1152_v48, %v674_v62, %v1193_v1  ;;  %v588_v3 = vadd.s32 536870912, %v587_v60  ;;  %v670_v6 = vsel %vm664_vm12, %v667_v45, %v669_v61 }
 0x117   :  { %v1197_v4 = vmul.u32.u64.low %v1152_v48, %v678_v0  ;;  %v1198_v5 = vmul.u32.u64.high %v1152_v48, %v678_v0, %v1197_v4  ;;  %v686_v10 = vmul.u32 %v1152_v48, %v670_v6  ;;  %vm619_vm11 = vweird.f32 %v1140_v29 }
 0x118   :  { %v589_v7 = vshrl.u32 %v588_v3, 30  ;;  %v689_v8 = vadd.s32 1, %v1194_v2 }
 0x119   :  { %vm688_vm13 = vc.u32 %v1198_v5, %v1193_v1  ;;  %v687_v43 = vadd.s32 %v1193_v1, %v1198_v5 }
 0x11a   :  { %v590_v9 = vshll.u32 %v589_v7, 30  ;;  %v690_v49 = vsel %vm688_vm13, %v689_v8, %v1194_v2  ;;  %v613_v39 = vsub.s32 4, %v589_v7 }
 0x11b   :  { %v691_v12 = vadd.s32 %v690_v49, %v686_v10 }
 0x11c   :  { %v591_v11 = vsub.s32 %v587_v60, %v590_v9  ;;  %v614_v53 = vsel %vm529_vm0, %v613_v39, %v589_v7 }
 0x11d   :  { %v692_v14 = vadd.s32 536870912, %v691_v12  ;;  %v616_v58 = vsel %vm528_vm1, 0, %v614_v53 }
 0x11e   :  { %v593_v13 = vsub.s32 0, %v591_v11  ;;  %v620_v63 = vadd.s32 3, %v616_v58  ;;  %v831_v3 = vand.u32 3, %v616_v58 }
 0x11f   :  { %v693_v16 = vshrl.u32 %v692_v14, 30 }
 0x120   :  { %v973_v15 = vmin.u32 %v593_v13, %v591_v11  ;;  %v621_v2 = vand.u32 3, %v620_v63  ;;  %vm833_vm6 = vcmp.eq.s32.totalorder %v831_v3, 0  ;;  %vm836_vm7 = vcmp.eq.s32.totalorder %v831_v3, 2 }
 0x121   :  { %v694_v18 = vshll.u32 %v693_v16, 30  ;;  %v717_v62 = vsub.s32 4, %v693_v16  ;;  %vm832_vm10 = vcmp.lt.s32.totalorder %v831_v3, 2 }
 0x122   :  { %v595_v17 = vclz %v973_v15  ;;  %vm626_vm5 = vcmp.eq.s32.totalorder %v621_v2, 2  ;;  %vm623_vm8 = vcmp.eq.s32.totalorder %v621_v2, 0  ;;  %vm622_vm9 = vcmp.lt.s32.totalorder %v621_v2, 2 }
 0x123   :  { %v695_v20 = vsub.s32 %v691_v12, %v694_v18  ;;  %v718_v1 = vsel %vm633_vm2, %v717_v62, %v693_v16 }
 0x124   :  { %v974_v19 = vadd.s32 4294967294, %v595_v17  ;;  %v720_v6 = vsel %vm632_vm3, 0, %v718_v1 }
 0x125   :  { %v697_v22 = vsub.s32 0, %v695_v20  ;;  %v724_v49 = vadd.s32 3, %v720_v6  ;;  %v934_v18 = vand.u32 3, %v720_v6 }
 0x126   :  { %vm975_vm14 = vcmp.lt.s32.totalorder %v974_v19, 0 }
 0x127   :  { %v598_v21 = vsel %vm975_vm14, 0, %v974_v19  ;;  %v977_v25 = vmin.u32 %v697_v22, %v695_v20  ;;  %v725_v17 = vand.u32 3, %v724_v49  ;;  %vm939_vm13 = vcmp.eq.s32.totalorder %v934_v18, 2 }
 0x128   :  { %v599_v48 = vsub.s32 32, %v598_v21  ;;  %v603_v24 = vsub.s32 4294967266, %v598_v21  ;;  %v600_v26 = vshll.u32 %v591_v11, %v598_v21 }
 0x129   :  { %v699_v32 = vclz %v977_v25  ;;  %vm730_vm12 = vcmp.eq.s32.totalorder %v725_v17, 2  ;;  %vm727_vm14 = vcmp.eq.s32.totalorder %v725_v17, 0 }
 0x12a   :  { %v601_v27 = vshrl.u32 %v583_v23, %v599_v48  ;;  %v604_v30 = vadd.s32 127, %v603_v24 }
 0x12b   :  { %v978_v37 = vadd.s32 4294967294, %v699_v32 }
 0x12c   :  { %v602_v34 = vor.u32 %v601_v27, %v600_v26  ;;  %v605_v35 = vshll.u32 %v604_v30, 23 }
 0x12d   :  { %vm979_vm15 = vcmp.lt.s32.totalorder %v978_v37, 0 }
 0x12e   :  { %v606_v38 = vor.u32 4788187, %v605_v35  ;;  %v609_v41 = vcvt.s32.f32 %v602_v34  ;;  %v702_v42 = vsel %vm979_vm15, 0, %v978_v37  ;;  %vm936_vm15 = vcmp.eq.s32.totalorder %v934_v18, 0 }
 0x12f   :  { %v703_v44 = vsub.s32 32, %v702_v42  ;;  %v707_v46 = vsub.s32 4294967266, %v702_v42  ;;  %v704_v47 = vshll.u32 %v695_v20, %v702_v42 }
 0x130   :  { %v607_v40 = vand.u32 2147483647, %v606_v38 }
 0x131   :  { %v705_v51 = vshrl.u32 %v687_v43, %v703_v44  ;;  %v708_v54 = vadd.s32 127, %v707_v46 }
 0x132   :  { %v610_v36 = vmul.f32 %v609_v41, %v607_v40 }
 0x133   :  { %v706_v56 = vor.u32 %v705_v51, %v704_v47  ;;  %v709_v57 = vshll.u32 %v708_v54, 23 }
 0x134   :  { %v611_v55 = vxor.u32 2147483648, %v610_v36 }
 0x135   :  { %v710_v50 = vor.u32 4788187, %v709_v57  ;;  %v713_v60 = vcvt.s32.f32 %v706_v56 }
 0x136   :  { %v612_v45 = vsel %vm529_vm0, %v611_v55, %v610_v36  ;;  %vm726_vm0 = vcmp.lt.s32.totalorder %v725_v17, 2 }
 0x137   :  { %v615_v52 = vsel %vm528_vm1, %v1140_v29, %v612_v45  ;;  %v711_v59 = vand.u32 2147483647, %v710_v50  ;;  %vm935_vm1 = vcmp.lt.s32.totalorder %v934_v18, 2 }
 0x138   :  { %1064 = vcosq.f32 %v615_v52 }
 0x139   :  { %1066 = vsinq.f32 %v615_v52  ;;  %v714_v61 = vmul.f32 %v713_v60, %v711_v59 }
 0x13b   :  { %v715_v0 = vxor.u32 2147483648, %v714_v61 }
 0x13d   :  { %v716_v33 = vsel %vm633_vm2, %v715_v0, %v714_v61  ;;  %vm723_vm2 = vweird.f32 %v1138_v28 }
 0x13e   :  { %v719_v4 = vsel %vm632_vm3, %v1138_v28, %v716_v33  ;;  %vm952_vm3 = vcmask 294032  }
 0x13f   :  { %1068 = vcosq.f32 %v719_v4 }
 0x140   :  { %1070 = vsinq.f32 %v719_v4 }
 0x142   :  { %v1065_v5 = vpop.eup %1064 }
 0x143   :  { %v1067_v7 = vpop.eup %1066  ;;  %v627_v8 = vxor.u32 2147483648, %v1065_v5 }
 0x144   :  { %v624_v9 = vxor.u32 2147483648, %v1067_v7 }
 0x145   :  { %v838_v10 = vsel %vm836_vm7, %v627_v8, %v1067_v7  ;;  %v628_v31 = vsel %vm626_vm5, %v627_v8, %v1067_v7 }
 0x146   :  { %v835_v11 = vsel %vm833_vm6, %v1065_v5, %v624_v9  ;;  %v625_v12 = vsel %vm623_vm8, %v1065_v5, %v624_v9 }
 0x147   :  { %v839_v13 = vsel %vm832_vm10, %v835_v11, %v838_v10  ;;  %v629_v14 = vsel %vm622_vm9, %v625_v12, %v628_v31 }
 0x148   :  { %v840_v15 = vsel %vm619_vm11, nan, %v839_v13  ;;  %v630_v16 = vsel %vm619_vm11, nan, %v629_v14 }
 0x149   :  { %946 = vrot.lane.b32.xlu0 %v840_v15, %s1102_s1  ;;  %736 = vst.msk [vmem:[#allocation2] sm:$0xff] %vm735_vm4, %v630_v16  ;;  %v1069_v19 = vpop.eup %1068 }
 0x14a   :  { %v1071_v20 = vpop.eup %1070  ;;  %v731_v21 = vxor.u32 2147483648, %v1069_v19 }
 0x14b   :  { %v728_v22 = vxor.u32 2147483648, %v1071_v20 }
 0x14c   :  { %v732_v23 = vsel %vm730_vm12, %v731_v21, %v1071_v20  ;;  %v941_v29 = vsel %vm939_vm13, %v731_v21, %v1071_v20 }
 0x14d   :  { %v729_v48 = vsel %vm727_vm14, %v1069_v19, %v728_v22  ;;  %v938_v24 = vsel %vm936_vm15, %v1069_v19, %v728_v22 }
 0x14e   :  { %v733_v25 = vsel %vm726_vm0, %v729_v48, %v732_v23  ;;  %v942_v26 = vsel %vm935_vm1, %v938_v24, %v941_v29 }
 0x14f   :  { %v734_v27 = vsel %vm723_vm2, nan, %v733_v25  ;;  %v943_v30 = vsel %vm723_vm2, nan, %v942_v26 }
 0x150   :  { %948 = vrot.lane.b32.xlu0 %v943_v30, %s1102_s1  ;;  %737 = vst.msk [vmem:[#allocation2 + $0x8] sm:$0xff] %vm735_vm4, %v734_v27 }
 0x1bb   :  { %v947_v32 = vpop.permute.xlu0 %946 }
 0x1bc   :  { %953 = vst.msk [vmem:[#allocation2] sm:$0xff] %vm952_vm3, %v947_v32 }
 0x1c2   :  { %v949_v34 = vpop.permute.xlu0 %948 }
 0x1c3   :  { %954 = vst.msk [vmem:[#allocation2 + $0x8] sm:$0xff] %vm952_vm3, %v949_v34 }
 0x1c4   :  { %1083 = shalt.err (!%p1080_p4)
}
 0x1c5   :  { %s1084_s23 = scalar_lea.hbm %s1233_s3, 256 }
 0x1c6   :  { %p1085_p5 = scmp.ne.s32.totalorder %s1233_s3, %s1084_s23  ;;  %p1088_p6 = scmp.lt.u32.totalorder %s1084_s23, %s1233_s3 }
 0x1c8   :  { %p1090_p7 = pnand %p1088_p6, %p1085_p5 }
 0x1ca   :  { %1093 = shalt.err (!%p1090_p7)
}
 0x1cb   :  { %s1104_s28 = smov 128   ;;  %s1105_s29 = smov 8  }
 0x1cc   :  { %966 = dma.vmem_to_hbm [thread:$0]  %s961_s19, 256, %s1233_s3, [#allocation3], %s1104_s28, %s1104_s28, %s1105_s29  }
 0x1cd   :  { %1094 = dma.done.wait [#allocation3], 256  }
 0x1ce   :  { %1095 = vsyncadd [#allocation3], 4294967040 }
 0x1cf   :  { %970 = vsyncpa [#allocation3], 1 }

</bundles_post_ra>
